<compile_context>
chip_gen: v5e
topology: v5e:2x2
jax: 0.10.0
libtpu: 0.0.40
codegen_flags: <defaults>
</compile_context>

<pallas_src>
import functools

import jax
import jax.numpy as jnp
from jax.experimental import pallas as pl
from jax.experimental.pallas import tpu as pltpu


# ---------------------------------------------------------------------------
# Kernel 1: streaming per-lane MSE partial sums over the flattened feature maps
# ---------------------------------------------------------------------------
def _mse_partial_kernel(map_t_ref, map_s_ref, out_ref, *,
                        valid_rows, tile_rows, tiles_per_chunk):
    p = pl.program_id(0)      # chunk axis ("parallel" -> megacore split on v7x)
    i = pl.program_id(1)      # streaming / reduction axis ("arbitrary")

    @pl.when(i == 0)
    def _init():
        out_ref[...] = jnp.zeros_like(out_ref)

    # Upcast in-kernel so bf16/fp16 maps stream at native width over HBM.
    diff = map_t_ref[...].astype(jnp.float32) - map_s_ref[...].astype(jnp.float32)
    sq = diff * diff

    # Mask the ragged tail tile / fully clamped tiles (unpadded inputs).
    tile_idx = p * tiles_per_chunk + i            # unclamped global tile index
    row0 = tile_idx * tile_rows
    rid = row0 + jax.lax.broadcasted_iota(jnp.int32, sq.shape, 0)
    sq = jnp.where(rid < valid_rows, sq, 0.0)

    # Per-lane partial sums; sublane reduce runs on the XLU, hidden under DMA.
    out_ref[...] += jnp.sum(sq, axis=0, keepdims=True)


# ---------------------------------------------------------------------------
# Kernel 2: tiny epilogue — CE + T^2-scaled KL on the logits + combine with MSE
# ---------------------------------------------------------------------------
def _ce_kl_combine_kernel(pred_s_ref, pred_t_ref, label_ref, msep_ref, out_ref,
                          *, T, alpha, beta, mse_denom):
    ps = pred_s_ref[...].astype(jnp.float32)            # (B, C)
    pt = pred_t_ref[...].astype(jnp.float32)
    b, c = ps.shape

    # ---- cross entropy on student logits (reduction='mean' over batch) ----
    m_s = jnp.max(ps, axis=-1, keepdims=True)
    lse_s = jnp.log(jnp.sum(jnp.exp(ps - m_s), axis=-1, keepdims=True)) + m_s
    col_ids = jax.lax.broadcasted_iota(jnp.int32, (b, c), 1)
    onehot = col_ids == label_ref[...]                   # (B,C) via (B,1) bcast
    picked = jnp.sum(jnp.where(onehot, ps, 0.0), axis=-1, keepdims=True)
    loss_ce = jnp.sum(lse_s - picked) / jnp.float32(b)

    # ---- KLDivLoss (PyTorch default reduction='mean' = per-element mean)
    #      on T-scaled logits, scaled by T^2 ----
    inv_t = jnp.float32(1.0 / T)
    st = ps * inv_t
    tt = pt * inv_t
    m_st = jnp.max(st, axis=-1, keepdims=True)
    logp_s = st - (jnp.log(jnp.sum(jnp.exp(st - m_st), axis=-1,
                                   keepdims=True)) + m_st)
    m_tt = jnp.max(tt, axis=-1, keepdims=True)
    logp_t = tt - (jnp.log(jnp.sum(jnp.exp(tt - m_tt), axis=-1,
                                   keepdims=True)) + m_tt)
    p_t = jnp.exp(logp_t)
    loss_kl = (jnp.sum(p_t * (logp_t - logp_s)) / jnp.float32(b * c)
               * jnp.float32(T * T))

    # ---- MSE from the streamed per-lane / per-chunk partial sums ----
    loss_l2 = jnp.sum(msep_ref[...]) / jnp.float32(mse_denom)

    out_ref[0, 0] = (loss_ce + jnp.float32(alpha) * loss_kl
                     + jnp.float32(beta) * loss_l2)


# ---------------------------------------------------------------------------
# Wrapper
# ---------------------------------------------------------------------------
def _choose_cols(total, target=1024, max_cols=4096):
    """Multiple-of-128 divisor of `total` closest to `target` (None if none)."""
    best = None
    c = 128
    limit = min(total, max_cols)
    while c <= limit:
        if total % c == 0:
            if best is None or abs(c - target) <= abs(best - target):
                best = c
        c += 128
    return best


def kd_loss_all(map_teacher, map_student, pred_teacher, pred_student, label,
                T=2.0, alpha=0.5, beta=0.5, *,
                target_cols=1024, tile_bytes=4 * 1024 * 1024, num_chunks=2):
    """Pallas equivalent of KDLossAll.forward (all reductions = 'mean')."""
    total = int(map_teacher.size)
    assert int(map_student.size) == total and total > 0
    b, c = pred_student.shape
    assert pred_teacher.shape == (b, c) and label.shape[0] == b

    # ---- copy-free, lane-dense 2-D view of the feature maps (no jnp.pad) ----
    cols = _choose_cols(total, target=int(target_cols))
    if cols is not None:
        rows = total // cols
        map_t2 = map_teacher.reshape(rows, cols)
        map_s2 = map_student.reshape(rows, cols)
    else:
        # Rare fallback: flattened size has no multiple-of-128 divisor.
        cols = 128
        rows = -(-total // cols)
        pad = rows * cols - total
        map_t2 = jnp.pad(map_teacher.reshape(-1), (0, pad)).reshape(rows, cols)
        map_s2 = jnp.pad(map_student.reshape(-1), (0, pad)).reshape(rows, cols)

    itemsize_t = jnp.dtype(map_teacher.dtype).itemsize
    itemsize_s = jnp.dtype(map_student.dtype).itemsize
    itemsize = max(itemsize_t, itemsize_s)

    # ---- tile sizing: ~tile_bytes per streamed input tile, 2-deep buffering ----
    if rows <= 8:
        tile_rows = rows                        # block == full rows (allowed)
    else:
        rows_cap = (rows // 8) * 8
        budget_rows = (int(tile_bytes) // (cols * itemsize) // 8) * 8
        tile_rows = max(8, min(rows_cap, budget_rows))
    n_tiles = -(-rows // tile_rows)             # cdiv
    num_chunks = max(1, min(int(num_chunks), n_tiles))
    tiles_per_chunk = -(-n_tiles // num_chunks)
    last_tile = n_tiles - 1

    def tile_map(p, i):
        # Clamp fully out-of-range tiles (last chunk when n_tiles % num_chunks
        # != 0); their contribution is masked to zero inside the kernel.
        return (jnp.minimum(p * tiles_per_chunk + i, last_tile), 0)

    mse_kernel = functools.partial(_mse_partial_kernel,
                                   valid_rows=rows, tile_rows=tile_rows,
                                   tiles_per_chunk=tiles_per_chunk)

    cost = pl.CostEstimate(
        flops=int(3 * rows * cols),
        transcendentals=0,
        bytes_accessed=int(rows * cols * (itemsize_t + itemsize_s)
                           + num_chunks * cols * 4))

    mse_partials = pl.pallas_call(
        mse_kernel,
        out_shape=jax.ShapeDtypeStruct((num_chunks, cols), jnp.float32),
        grid=(num_chunks, tiles_per_chunk),
        in_specs=[
            pl.BlockSpec((tile_rows, cols), tile_map),   # teacher map tile
            pl.BlockSpec((tile_rows, cols), tile_map),   # student map tile
        ],
        # Per-chunk resident output row doubles as the accumulator.
        out_specs=pl.BlockSpec((1, cols), lambda p, i: (p, 0)),
        compiler_params=pltpu.CompilerParams(
            dimension_semantics=("parallel", "arbitrary"),
            vmem_limit_bytes=48 * 1024 * 1024),
        cost_estimate=cost,
    )(map_t2, map_s2)

    # ---- tiny second call: CE + KL on the logits + final combine ----
    label2d = label.astype(jnp.int32).reshape(b, 1)
    epi_kernel = functools.partial(_ce_kl_combine_kernel, T=float(T),
                                   alpha=float(alpha), beta=float(beta),
                                   mse_denom=total)
    out = pl.pallas_call(
        epi_kernel,
        out_shape=jax.ShapeDtypeStruct((1, 1), jnp.float32),
        grid=(1,),
        in_specs=[
            pl.BlockSpec((b, c), lambda i: (0, 0)),              # student logits
            pl.BlockSpec((b, c), lambda i: (0, 0)),              # teacher logits
            pl.BlockSpec((b, 1), lambda i: (0, 0)),              # labels
            pl.BlockSpec((num_chunks, cols), lambda i: (0, 0)),  # MSE partials
        ],
        out_specs=pl.BlockSpec(memory_space=pltpu.MemorySpace.SMEM),
        compiler_params=pltpu.CompilerParams(
            dimension_semantics=("arbitrary",)),
    )(pred_student, pred_teacher, label2d, mse_partials)
    return out[0, 0]


# ---------------------------------------------------------------------------
# Pure-JAX reference (mirrors the PyTorch module)
# ---------------------------------------------------------------------------
def _reference(map_teacher, map_student, pred_teacher, pred_student, label,
               T=2.0, alpha=0.5, beta=0.5):
    ps = pred_student.astype(jnp.float32)
    pt = pred_teacher.astype(jnp.float32)
    logp = jax.nn.log_softmax(ps, axis=-1)
    ce = -jnp.mean(jnp.take_along_axis(logp, label[:, None], axis=-1))
    logp_s = jax.nn.log_softmax(ps / T, axis=-1)
    p_t = jax.nn.softmax(pt / T, axis=-1)
    kl = jnp.mean(p_t * (jnp.log(p_t) - logp_s)) * (T * T)
    mse = jnp.mean((map_teacher.astype(jnp.float32)
                    - map_student.astype(jnp.float32)) ** 2)
    return ce + alpha * kl + beta * mse


if __name__ == "__main__":
    key = jax.random.PRNGKey(0)
    k1, k2, k3, k4, k5 = jax.random.split(key, 5)

    B, C, H, W = 2, 4, 16, 16          # feature maps (NCHW)
    NUM_CLASSES = 10

    map_teacher = jax.random.normal(k1, (B, C, H, W), dtype=jnp.float32)
    map_student = jax.random.normal(k2, (B, C, H, W), dtype=jnp.float32)
    pred_teacher = jax.random.normal(k3, (B, NUM_CLASSES), dtype=jnp.float32)
    pred_student = jax.random.normal(k4, (B, NUM_CLASSES), dtype=jnp.float32)
    label = jax.random.randint(k5, (B,), 0, NUM_CLASSES, dtype=jnp.int32)

    # Default (production) tiling — single chunk / single tile at this size.
    ref = _reference(map_teacher, map_student, pred_teacher, pred_student, label)
    loss = kd_loss_all(map_teacher, map_student, pred_teacher, pred_student, label)
    jax.block_until_ready(loss)
    assert jnp.allclose(loss, ref, rtol=1e-4, atol=1e-5), (loss, ref)

    # Ragged multi-tile / multi-chunk path with native bf16 streaming:
    # rows=20, tile_rows=8 -> 3 tiles over 2 chunks, exercising the in-kernel
    # tail masking AND the clamped (fully out-of-range) tile in chunk 1.
    B2, C2 = 5, 2
    mt2 = jax.random.normal(k1, (B2, C2, H, W), dtype=jnp.bfloat16)
    ms2 = jax.random.normal(k2, (B2, C2, H, W), dtype=jnp.bfloat16)
    ref2 = _reference(mt2, ms2, pred_teacher, pred_student, label)
    loss2 = kd_loss_all(mt2, ms2, pred_teacher, pred_student, label,
                        target_cols=128, tile_bytes=2048)
    jax.block_until_ready(loss2)
    assert jnp.allclose(loss2, ref2, rtol=1e-3, atol=1e-4), (loss2, ref2)

    print("KERNEL_OK")
</pallas_src>

<mosaic_0001>
module attributes {stable_mosaic.version = 11 : i64} {
  func.func @_mse_partial_kernel(%arg0: i32, %arg1: i32, %arg2: memref<2x1024xf32, #tpu.memory_space<vmem>>, %arg3: memref<2x1024xf32, #tpu.memory_space<vmem>>, %arg4: memref<1x1024xf32, #tpu.memory_space<vmem>>) attributes {dimension_semantics = [#tpu.dimension_semantics<parallel>, #tpu.dimension_semantics<arbitrary>], iteration_bounds = array<i64: 1, 1>, scalar_prefetch = 0 : i64, scratch_operands = 0 : i64, tpu.core_type = #tpu.core_type<tc>, window_params = [{transform_indices = @transform_0, window_bounds = array<i64: 2, 1024>}, {transform_indices = @transform_1, window_bounds = array<i64: 2, 1024>}, {transform_indices = @transform_2, window_bounds = array<i64: 1, 1024>}]} {
    %c0_i32 = arith.constant 0 : i32
    %0 = arith.cmpi eq, %arg1, %c0_i32 : i32
    %1 = arith.extui %0 : i1 to i32
    %c0_i32_0 = arith.constant 0 : i32
    %2 = arith.cmpi ne, %1, %c0_i32_0 : i32
    scf.if %2 {
      %cst_10 = arith.constant 0.000000e+00 : f32
      %22 = vector.broadcast %cst_10 : f32 to vector<1x1024xf32>
      %c0_11 = arith.constant 0 : index
      %c0_12 = arith.constant 0 : index
      %23 = vector.load %arg4[%c0_11, %c0_12] : memref<1x1024xf32, #tpu.memory_space<vmem>>, vector<1x1024xf32>
      tpu.vector_store %arg4[%c0_11, %c0_12], %22 {strides = array<i32>} : memref<1x1024xf32, #tpu.memory_space<vmem>>, vector<1x1024xf32>,
    } else {
    }
    %c0 = arith.constant 0 : index
    %c0_1 = arith.constant 0 : index
    %3 = vector.load %arg2[%c0, %c0_1] : memref<2x1024xf32, #tpu.memory_space<vmem>>, vector<2x1024xf32>
    %c0_2 = arith.constant 0 : index
    %c0_3 = arith.constant 0 : index
    %4 = vector.load %arg3[%c0_2, %c0_3] : memref<2x1024xf32, #tpu.memory_space<vmem>>, vector<2x1024xf32>
    %5 = arith.subf %3, %4 : vector<2x1024xf32>
    %6 = arith.mulf %5, %5 : vector<2x1024xf32>
    %c1_i32 = arith.constant 1 : i32
    %7 = arith.muli %arg0, %c1_i32 : i32
    %8 = arith.addi %7, %arg1 : i32
    %c2_i32 = arith.constant 2 : i32
    %9 = arith.muli %8, %c2_i32 : i32
    %10 = tpu.iota {dimensions = array<i32: 0>} : vector<2x1024xi32>
    %11 = vector.broadcast %9 : i32 to vector<2x1024xi32>
    %12 = arith.addi %11, %10 : vector<2x1024xi32>
    %c2_i32_4 = arith.constant 2 : i32
    %13 = vector.broadcast %c2_i32_4 : i32 to vector<2x1024xi32>
    %14 = arith.cmpi slt, %12, %13 : vector<2x1024xi32>
    %cst = arith.constant 0.000000e+00 : f32
    %15 = vector.broadcast %cst : f32 to vector<2x1024xf32>
    %16 = arith.select %14, %6, %15 : vector<2x1024xi1>, vector<2x1024xf32>
    %c0_5 = arith.constant 0 : index
    %c0_6 = arith.constant 0 : index
    %17 = vector.load %arg4[%c0_5, %c0_6] : memref<1x1024xf32, #tpu.memory_space<vmem>>, vector<1x1024xf32>
    %cst_7 = arith.constant dense<0.000000e+00> : vector<1024xf32>
    %18 = vector.multi_reduction <add>, %16, %cst_7 [0] : vector<2x1024xf32> to vector<1024xf32>
    %19 = vector.shape_cast %18 : vector<1024xf32> to vector<1x1024xf32>
    %20 = arith.addf %17, %19 : vector<1x1024xf32>
    %c0_8 = arith.constant 0 : index
    %c0_9 = arith.constant 0 : index
    %21 = vector.load %arg4[%c0_8, %c0_9] : memref<1x1024xf32, #tpu.memory_space<vmem>>, vector<1x1024xf32>
    tpu.vector_store %arg4[%c0_8, %c0_9], %20 {strides = array<i32>} : memref<1x1024xf32, #tpu.memory_space<vmem>>, vector<1x1024xf32>,
    return
  }
  func.func @transform_0(%arg0: i32, %arg1: i32) -> (i32, i32) {
    %c1_i32 = arith.constant 1 : i32
    %0 = arith.muli %arg0, %c1_i32 : i32
    %1 = arith.addi %0, %arg1 : i32
    %c0_i32 = arith.constant 0 : i32
    %2 = arith.minsi %1, %c0_i32 : i32
    %c0_i32_0 = arith.constant 0 : i32
    %c0_i32_1 = arith.constant 0 : i32
    return %2, %c0_i32_0 : i32, i32
  }
  func.func @transform_1(%arg0: i32, %arg1: i32) -> (i32, i32) {
    %c1_i32 = arith.constant 1 : i32
    %0 = arith.muli %arg0, %c1_i32 : i32
    %1 = arith.addi %0, %arg1 : i32
    %c0_i32 = arith.constant 0 : i32
    %2 = arith.minsi %1, %c0_i32 : i32
    %c0_i32_0 = arith.constant 0 : i32
    %c0_i32_1 = arith.constant 0 : i32
    return %2, %c0_i32_0 : i32, i32
  }
  func.func @transform_2(%arg0: i32, %arg1: i32) -> (i32, i32) {
    %c0_i32 = arith.constant 0 : i32
    %c0_i32_0 = arith.constant 0 : i32
    return %arg0, %c0_i32 : i32, i32
  }
}

</mosaic_0001>

<bundles_post_ra>
// kernel: tpu_custom_call.1
= control target key start
LH: loop header
LB: loop body
LE: loop exit
PB: predicated region body
PF: predicated region fallthrough
CT: control target
= control target key end

     0   :  { %7 = vsyncpa [#allocation3], 0  ;;  %s347_s0 = inlined_call_operand.hbm [shape: f32[2,1024], index: 0, kind: input, shape index: {}]   ;;  %s348_s1 = inlined_call_operand.hbm [shape: f32[2,1024], index: 1, kind: input, shape index: {}]   ;;  %s349_s2 = inlined_call_operand.hbm [shape: f32[1,1024], index: 2, kind: output, shape index: {}]  }
   0x1   :  { %8 = vsyncpa [#allocation6], 0 }
   0x2   :  { %9 = vsyncpa [#allocation4], 0  ;;  %s21_s11 = sshll.u32 %s347_s0, 4  ;;  %s300_s12 = smov [#allocation2]   ;;  %s22_s11 = int_to_ptr.hbm [resolvable:$true] %s21_s11 }
   0x3   :  { %s23_s13 = sshll.u32 %s300_s12, 4  ;;  %s38_s16 = sshll.u32 %s348_s1, 4  ;;  %s24_s13 = int_to_ptr.vmem [resolvable:$true] %s23_s13  ;;  %s39_s16 = int_to_ptr.hbm [resolvable:$true] %s38_s16 }
   0x4   :  { %26 = dma.hbm_to_vmem [thread:$0]  %s22_s11, 256, %s24_s13, [#allocation3]  }
   0x5   :  { %s301_s17 = smov [#allocation5]  }
   0x6   :  { %s40_s18 = sshll.u32 %s301_s17, 4  ;;  %s41_s18 = int_to_ptr.vmem [resolvable:$true] %s40_s18 }
   0x7   :  { %43 = dma.hbm_to_vmem [thread:$0]  %s39_s16, 256, %s41_s18, [#allocation6]  }
   0x8   :  { %294 = dma.done.wait [#allocation3], 256  }
   0x9   :  { %295 = vsyncadd [#allocation3], 4294967040 }
   0xa   :  { %296 = dma.done.wait [#allocation6], 256  }
   0xb   :  { %297 = vsyncadd [#allocation6], 4294967040  ;;  %v63_v0 = vld [vmem:[#allocation2] sm:$0xff]  ;;  %v65_v1 = vld [vmem:[#allocation5] sm:$0xff]  ;;  %v73_v7 = vlaneseq  ;;  %vm108_vm1 = vcmask 1041408   ;;  %vm180_vm2 = vcmask 1040384  }
   0xc   :  { %v64_v2 = vld [vmem:[#allocation2 + $0x8] sm:$0xff]  ;;  %v67_v3 = vsub.f32 %v63_v0, %v65_v1  ;;  %v66_v4 = vld [vmem:[#allocation5 + $0x8] sm:$0xff]  ;;  %vm182_vm3 = vcmask 1042434   ;;  %vm185_vm4 = vcmask 1044484   ;;  %vm187_vm5 = vcmask 1046534   ;;  %s302_s0 = smov [#allocation7]  }
   0xd   :  { %v68_v5 = vsub.f32 %v64_v2, %v66_v4  ;;  %v74_v9 = vshrl.u32 %v73_v7, 7  ;;  %vm189_vm6 = vcmask 1045508   ;;  %vm191_vm7 = vcmask 1043456   ;;  %s201_s1 = sshll.u32 %s302_s0, 4  ;;  %s203_s21 = sshll.u32 %s349_s2, 4  ;;  %s202_s1 = int_to_ptr.vmem [resolvable:$true] %s201_s1  ;;  %s204_s21 = int_to_ptr.hbm [resolvable:$true] %s203_s21 }
   0xe   :  { %v69_v6 = vmul.f32 %v67_v3, %v67_v3 }
   0xf   :  { %v70_v8 = vmul.f32 %v68_v5, %v68_v5  ;;  %vm77_vm0 = vcmp.lt.s32.totalorder %v74_v9, 2 }
  0x10   :  { %80 = vst [vmem:[#allocation1] ss:$4 sm:$0xff] %v69_v6 }
  0x11   :  { %82 = vst [vmem:[#allocation1 + $0x20] ss:$4 sm:$0xff] %v70_v8 }
  0x17   :  { %v83_v10 = vld.sshfl [vmem:[#allocation1] sm:$0xff pattern:$0x73625140]  ;;  %v84_v11 = vld.sshfl [vmem:[#allocation1 + $0x8] sm:$0xff pattern:$0x73625140] }
  0x18   :  { %v85_v12 = vld.sshfl [vmem:[#allocation1 + $0x10] sm:$0xff pattern:$0x73625140]  ;;  %v86_v13 = vld.sshfl [vmem:[#allocation1 + $0x18] sm:$0xff pattern:$0x73625140] }
  0x19   :  { %v87_v14 = vld.sshfl [vmem:[#allocation1 + $0x20] sm:$0xff pattern:$0x73625140]  ;;  %v88_v15 = vld.sshfl [vmem:[#allocation1 + $0x28] sm:$0xff pattern:$0x73625140] }
  0x1a   :  { %v89_v16 = vld.sshfl [vmem:[#allocation1 + $0x30] sm:$0xff pattern:$0x73625140]  ;;  %v90_v17 = vld.sshfl [vmem:[#allocation1 + $0x38] sm:$0xff pattern:$0x73625140] }
  0x1b   :  { %v99_v18 = vsel %vm77_vm0, %v83_v10, 0.0  ;;  %v100_v19 = vsel %vm77_vm0, %v84_v11, 0.0  ;;  %v101_v20 = vsel %vm77_vm0, %v85_v12, 0.0  ;;  %v102_v21 = vsel %vm77_vm0, %v86_v13, 0.0 }
  0x1c   :  { %v103_v22 = vsel %vm77_vm0, %v87_v14, 0.0  ;;  %v104_v23 = vsel %vm77_vm0, %v88_v15, 0.0  ;;  %v105_v24 = vsel %vm77_vm0, %v89_v16, 0.0  ;;  %v106_v25 = vsel %vm77_vm0, %v90_v17, 0.0 }
  0x1d   :  { %v109_v26 = vsel %vm108_vm1, %v99_v18, 0.0  ;;  %v116_v27 = vsel %vm108_vm1, %v100_v19, 0.0  ;;  %v123_v28 = vsel %vm108_vm1, %v101_v20, 0.0  ;;  %v130_v29 = vsel %vm108_vm1, %v102_v21, 0.0 }
  0x1e   :  { %v110_v30 = vrot.slane %v109_v26, 4  ;;  %v117_v31 = vrot.slane %v116_v27, 4  ;;  %v124_v32 = vrot.slane %v123_v28, 4  ;;  %v131_v33 = vrot.slane %v130_v29, 4 }
  0x1f   :  { %v137_v34 = vsel %vm108_vm1, %v103_v22, 0.0  ;;  %v144_v35 = vsel %vm108_vm1, %v104_v23, 0.0  ;;  %v151_v36 = vsel %vm108_vm1, %v105_v24, 0.0  ;;  %v158_v37 = vsel %vm108_vm1, %v106_v25, 0.0 }
  0x20   :  { %v111_v38 = vadd.f32 %v110_v30, %v109_v26  ;;  %v118_v39 = vadd.f32 %v117_v31, %v116_v27  ;;  %v125_v40 = vadd.f32 %v124_v32, %v123_v28  ;;  %v132_v41 = vadd.f32 %v131_v33, %v130_v29 }
  0x21   :  { %v138_v42 = vrot.slane %v137_v34, 4  ;;  %v145_v43 = vrot.slane %v144_v35, 4  ;;  %v152_v44 = vrot.slane %v151_v36, 4  ;;  %v159_v45 = vrot.slane %v158_v37, 4 }
  0x22   :  { %v112_v46 = vrot.slane %v111_v38, 2  ;;  %v119_v47 = vrot.slane %v118_v39, 2  ;;  %v126_v48 = vrot.slane %v125_v40, 2  ;;  %v133_v49 = vrot.slane %v132_v41, 2 }
  0x23   :  { %v139_v50 = vadd.f32 %v138_v42, %v137_v34  ;;  %v146_v51 = vadd.f32 %v145_v43, %v144_v35  ;;  %v153_v52 = vadd.f32 %v152_v44, %v151_v36  ;;  %v160_v53 = vadd.f32 %v159_v45, %v158_v37 }
  0x24   :  { %v113_v54 = vadd.f32 %v112_v46, %v111_v38  ;;  %v120_v55 = vadd.f32 %v119_v47, %v118_v39  ;;  %v127_v56 = vadd.f32 %v126_v48, %v125_v40  ;;  %v134_v57 = vadd.f32 %v133_v49, %v132_v41 }
  0x25   :  { %v140_v58 = vrot.slane %v139_v50, 2  ;;  %v147_v59 = vrot.slane %v146_v51, 2  ;;  %v154_v60 = vrot.slane %v153_v52, 2  ;;  %v161_v61 = vrot.slane %v160_v53, 2 }
  0x26   :  { %v114_v62 = vrot.slane %v113_v54, 1  ;;  %v121_v63 = vrot.slane %v120_v55, 1  ;;  %v128_v0 = vrot.slane %v127_v56, 1  ;;  %v135_v1 = vrot.slane %v134_v57, 1 }
  0x27   :  { %v141_v2 = vadd.f32 %v140_v58, %v139_v50  ;;  %v148_v3 = vadd.f32 %v147_v59, %v146_v51  ;;  %v155_v4 = vadd.f32 %v154_v60, %v153_v52  ;;  %v162_v5 = vadd.f32 %v161_v61, %v160_v53 }
  0x28   :  { %v122_v6 = vadd.f32 %v121_v63, %v120_v55  ;;  %v129_v7 = vadd.f32 %v128_v0, %v127_v56  ;;  %v136_v8 = vadd.f32 %v135_v1, %v134_v57  ;;  %v115_v13 = vadd.f32 %v114_v62, %v113_v54 }
  0x29   :  { %v142_v9 = vrot.slane %v141_v2, 1  ;;  %v149_v10 = vrot.slane %v148_v3, 1  ;;  %v156_v11 = vrot.slane %v155_v4, 1  ;;  %v163_v12 = vrot.slane %v162_v5, 1 }
  0x2a   :  { %v173_v14 = vrot.slane %v122_v6, 7  ;;  %v174_v15 = vrot.slane %v129_v7, 6  ;;  %v175_v16 = vrot.slane %v136_v8, 5 }
  0x2b   :  { %v143_v17 = vadd.f32 %v142_v9, %v141_v2  ;;  %v150_v18 = vadd.f32 %v149_v10, %v148_v3  ;;  %v157_v19 = vadd.f32 %v156_v11, %v155_v4  ;;  %v164_v20 = vadd.f32 %v163_v12, %v162_v5 }
  0x2c   :  { %v181_v21 = vsel %vm180_vm2, %v115_v13, %v173_v14  ;;  %v183_v22 = vsel %vm182_vm3, %v174_v15, %v175_v16 }
  0x2d   :  { %v176_v23 = vrot.slane %v143_v17, 4  ;;  %v177_v24 = vrot.slane %v150_v18, 3  ;;  %v178_v25 = vrot.slane %v157_v19, 2  ;;  %v179_v26 = vrot.slane %v164_v20, 1 }
  0x2e   :  { %v184_v27 = vsel %vm108_vm1, %v181_v21, %v183_v22 }
  0x2f   :  { %v186_v28 = vsel %vm185_vm4, %v176_v23, %v177_v24  ;;  %v188_v29 = vsel %vm187_vm5, %v178_v25, %v179_v26 }
  0x30   :  { %v190_v30 = vsel %vm189_vm6, %v186_v28, %v188_v29 }
  0x31   :  { %v192_v31 = vsel %vm191_vm7, %v184_v27, %v190_v30 }
  0x32   :  { %195 = vst [vmem:[#allocation7] sm:$0xff] %v192_v31 }
  0x33   :  { %206 = dma.vmem_to_hbm [thread:$0]  %s202_s1, 128, %s204_s21, [#allocation4]  }
  0x34   :  { %298 = dma.done.wait [#allocation4], 128  }
  0x35   :  { %299 = vsyncadd [#allocation4], 4294967168 }
  0x36   :  { %211 = vsyncpa [#allocation3], 1 }
  0x37   :  { %212 = vsyncpa [#allocation6], 1 }
  0x38   :  { %213 = vsyncpa [#allocation4], 1 }

</bundles_post_ra>
